<compile_context>
chip_gen: v6e
topology: v6e:2x2x1
jax: 0.10.0
libtpu: 0.0.40
codegen_flags: <defaults>
</compile_context>

<pallas_src>
import jax
import jax.numpy as jnp
from jax import lax
from jax.experimental import pallas as pl
from jax.experimental.pallas import tpu as pltpu


# ------------------------------- helpers ----------------------------------- #

def _round_up(x: int, m: int) -> int:
    return ((x + m - 1) // m) * m


def _round_down(x: int, m: int) -> int:
    return max(m, (x // m) * m)


# ----------------------------- Pallas wrapper ------------------------------ #

def similarity_pallas(src_emb: jax.Array, tgt_emb: jax.Array, *,
                      tm: int = 512, tn: int = 1024, tk: int | None = None,
                      compute_dtype=jnp.bfloat16,
                      out_dtype=jnp.float32) -> jax.Array:
    """src_emb: (B, D), tgt_emb: (T, D) -> (B, T) dot-product similarity."""
    B, D = src_emb.shape
    T, D2 = tgt_emb.shape
    assert D == D2

    # ---- tile selection -----------------------------------------------------
    # M / N: if the whole dim fits in one tile, use the exact dim (full-dim
    # blocks need no alignment and no padding). Otherwise keep aligned tiles
    # (tm multiple of 16 for bf16 sublane packing, tn multiple of 128 lanes)
    # and let pl.cdiv edge blocks handle the remainder.
    tm = B if B <= tm else _round_down(tm, 16)
    tn = T if T <= tn else _round_down(tn, 128)

    # K (reduction): default to the full embedding dim (capped) so the k grid
    # axis collapses to 1 for typical embedding sizes.
    if tk is None:
        tk = 2048
    if tk >= D:
        tk, Dp, nk = D, D, 1                 # full-D blocks, no K padding
    else:
        tk = _round_down(tk, 128)
        Dp = _round_up(D, tk)
        nk = Dp // tk

    src = src_emb.astype(compute_dtype)
    tgt = tgt_emb.astype(compute_dtype)
    if Dp != D:
        # Zero-pad only the reduction axis (zeros contribute 0 to the dots).
        src = jnp.pad(src, ((0, 0), (0, Dp - D)))
        tgt = jnp.pad(tgt, ((0, 0), (0, Dp - D)))

    gm = pl.cdiv(B, tm)
    gn = pl.cdiv(T, tn)

    # ---- cost / VMEM hints ----------------------------------------------------
    in_item = jnp.dtype(compute_dtype).itemsize
    out_item = jnp.dtype(out_dtype).itemsize
    cost = pl.CostEstimate(
        flops=int(2 * B * T * Dp),
        transcendentals=0,
        bytes_accessed=int(src.size * in_item * gn      # LHS re-read per j tile
                           + tgt.size * in_item * gm    # RHS re-read per i tile
                           + B * T * out_item),         # output written once
    )
    vmem_est = 2 * (tm * tk + tn * tk) * in_item + 2 * tm * tn * out_item
    vmem_limit = int(min(64 * 1024 * 1024, max(2 * vmem_est, 32 * 1024 * 1024)))

    # ---- kernel(s) ------------------------------------------------------------
    def _qkT(a, b):
        # (tm, tk) x (tn, tk) -> (tm, tn), contracting the trailing (K) dims;
        # MXU consumes the K-last RHS natively, output stays lane-dense.
        return lax.dot_general(a, b, dimension_numbers=(((1,), (1,)), ((), ())),
                               preferred_element_type=jnp.float32)

    if nk == 1:
        def kernel(src_ref, tgt_ref, out_ref):
            out_ref[...] = _qkT(src_ref[...], tgt_ref[...]).astype(out_ref.dtype)

        grid = (gm, gn)
        in_specs = [pl.BlockSpec((tm, tk), lambda i, j: (i, 0)),
                    pl.BlockSpec((tn, tk), lambda i, j: (j, 0))]
        out_specs = pl.BlockSpec((tm, tn), lambda i, j: (i, j))
        dims = ("parallel", "parallel")
    else:
        def kernel(src_ref, tgt_ref, out_ref):
            # Accumulate directly into the f32 output block: its block index is
            # constant across k, so it stays resident in VMEM (no scratch).
            k = pl.program_id(2)
            prod = _qkT(src_ref[...], tgt_ref[...])

            @pl.when(k == 0)
            def _():
                out_ref[...] = prod.astype(out_ref.dtype)

            @pl.when(k > 0)
            def _():
                out_ref[...] += prod.astype(out_ref.dtype)

        grid = (gm, gn, nk)
        in_specs = [pl.BlockSpec((tm, tk), lambda i, j, k: (i, k)),
                    pl.BlockSpec((tn, tk), lambda i, j, k: (j, k))]
        out_specs = pl.BlockSpec((tm, tn), lambda i, j, k: (i, j))
        dims = ("parallel", "parallel", "arbitrary")

    return pl.pallas_call(
        kernel,
        out_shape=jax.ShapeDtypeStruct((B, T), out_dtype),
        grid_spec=pltpu.PrefetchScalarGridSpec(
            num_scalar_prefetch=0,
            grid=grid,
            in_specs=in_specs,
            out_specs=out_specs,
        ),
        compiler_params=pltpu.CompilerParams(
            dimension_semantics=dims,
            vmem_limit_bytes=vmem_limit),
        cost_estimate=cost,
    )(src, tgt)


# ------------------------------ Module glue -------------------------------- #

def make_location_embedding(key, vocab_size: int, emb_dim: int) -> jax.Array:
    """LocationEmbedding.init(): normal init, then L2-normalize each row."""
    w = jax.random.normal(key, (vocab_size, emb_dim), dtype=jnp.float32)
    w = w / jnp.linalg.norm(w, axis=1, keepdims=True)
    return w


def similarity_forward(src_weight, tgt_weight, source_ids, target_ids,
                       tie_embeddings: bool = False, **kernel_kwargs) -> jax.Array:
    """Equivalent of Similarity.forward for 2-D targets."""
    # TODO(synk): fuse these row gathers into the kernel (scalar prefetch + DMA).
    source_emb = src_weight[source_ids]                       # (B, D) gather (glue)
    tgt_w = src_weight if tie_embeddings else tgt_weight
    target_emb = tgt_w[target_ids]                            # (T, D) gather (glue)
    # Hot path: dot-product similarity in the tiled Pallas kernel.
    return similarity_pallas(source_emb, target_emb, **kernel_kwargs)   # (B, T)


# --------------------------------- Main ------------------------------------ #

if __name__ == "__main__":
    key = jax.random.PRNGKey(0)
    (k_src, k_tgt, k_sid, k_tid,
     k2_src, k2_tgt, k2_sid, k2_tid) = jax.random.split(key, 8)

    # ---- small demo shapes (single full-dim block, k axis collapsed) ---- #
    vocab_size, emb_dim = 64, 32
    num_src, num_tgt = 8, 16

    src_weight = make_location_embedding(k_src, vocab_size, emb_dim)
    tgt_weight = make_location_embedding(k_tgt, vocab_size, emb_dim)
    source_ids = jax.random.randint(k_sid, (num_src,), 0, vocab_size)
    target_ids = jax.random.randint(k_tid, (num_tgt,), 0, vocab_size)

    sim = similarity_forward(src_weight, tgt_weight, source_ids, target_ids)
    sim = jax.block_until_ready(sim)
    assert sim.shape == (num_src, num_tgt)

    # Reference with bf16-cast operands (matches kernel's MXU inputs closely).
    s32 = src_weight[source_ids]
    t32 = tgt_weight[target_ids]
    ref_bf16 = (s32.astype(jnp.bfloat16).astype(jnp.float32)
                @ t32.astype(jnp.bfloat16).astype(jnp.float32).T)
    ref_f32 = s32 @ t32.T
    assert jnp.allclose(sim, ref_bf16, atol=1e-4, rtol=1e-4)
    assert jnp.allclose(sim, ref_f32, atol=2e-2, rtol=2e-2)

    # ---- larger case, non-tile-multiple B/T ---- #
    vocab2, emb2 = 512, 256
    ns2, nt2 = 24, 200
    src_w2 = make_location_embedding(k2_src, vocab2, emb2)
    tgt_w2 = make_location_embedding(k2_tgt, vocab2, emb2)
    sid2 = jax.random.randint(k2_sid, (ns2,), 0, vocab2)
    tid2 = jax.random.randint(k2_tid, (nt2,), 0, vocab2)

    s2 = src_w2[sid2]
    t2 = tgt_w2[tid2]
    ref2_bf16 = (s2.astype(jnp.bfloat16).astype(jnp.float32)
                 @ t2.astype(jnp.bfloat16).astype(jnp.float32).T)
    ref2_f32 = s2 @ t2.T

    # (a) default tk -> reduction axis collapsed (nk == 1)
    sim2 = similarity_forward(src_w2, tgt_w2, sid2, tid2)
    sim2 = jax.block_until_ready(sim2)
    assert sim2.shape == (ns2, nt2)
    assert jnp.allclose(sim2, ref2_bf16, atol=1e-4, rtol=1e-4)
    assert jnp.allclose(sim2, ref2_f32, atol=2e-2, rtol=2e-2)

    # (b) forced tk=128 -> exercises the k-axis accumulate-into-out_ref path
    sim2k = similarity_forward(src_w2, tgt_w2, sid2, tid2, tk=128)
    sim2k = jax.block_until_ready(sim2k)
    assert sim2k.shape == (ns2, nt2)
    assert jnp.allclose(sim2k, ref2_bf16, atol=1e-4, rtol=1e-4)
    assert jnp.allclose(sim2k, ref2_f32, atol=2e-2, rtol=2e-2)

    print("KERNEL_OK")
</pallas_src>

<mosaic_0001>
module attributes {stable_mosaic.version = 11 : i64} {
  func.func @kernel(%arg0: i32, %arg1: i32, %arg2: memref<8x32xbf16, #tpu.memory_space<vmem>>, %arg3: memref<16x32xbf16, #tpu.memory_space<vmem>>, %arg4: memref<8x16xf32, #tpu.memory_space<vmem>>) attributes {dimension_semantics = [#tpu.dimension_semantics<parallel>, #tpu.dimension_semantics<parallel>], iteration_bounds = array<i64: 1, 1>, scalar_prefetch = 0 : i64, scratch_operands = 0 : i64, tpu.core_type = #tpu.core_type<tc>, window_params = [{transform_indices = @transform_0, window_bounds = array<i64: 8, 32>}, {transform_indices = @transform_1, window_bounds = array<i64: 16, 32>}, {transform_indices = @transform_2, window_bounds = array<i64: 8, 16>}]} {
    %c0 = arith.constant 0 : index
    %c0_0 = arith.constant 0 : index
    %0 = vector.load %arg2[%c0, %c0_0] : memref<8x32xbf16, #tpu.memory_space<vmem>>, vector<8x32xbf16>
    %c0_1 = arith.constant 0 : index
    %c0_2 = arith.constant 0 : index
    %1 = vector.load %arg3[%c0_1, %c0_2] : memref<16x32xbf16, #tpu.memory_space<vmem>>, vector<16x32xbf16>
    %cst = arith.constant dense<0.000000e+00> : vector<8x16xf32>
    %2 = tpu.matmul %0, %1, %cst {dimension_numbers = #tpu.dot_dimension_numbers<[1], [1], [0], [0], [0, 0, 1, 0], [], []>} : vector<8x32xbf16>, vector<16x32xbf16>, vector<8x16xf32> -> vector<8x16xf32>
    %c0_3 = arith.constant 0 : index
    %c0_4 = arith.constant 0 : index
    %3 = vector.load %arg4[%c0_3, %c0_4] : memref<8x16xf32, #tpu.memory_space<vmem>>, vector<8x16xf32>
    tpu.vector_store %arg4[%c0_3, %c0_4], %2 {strides = array<i32>} : memref<8x16xf32, #tpu.memory_space<vmem>>, vector<8x16xf32>,
    return
  }
  func.func @transform_0(%arg0: i32, %arg1: i32) -> (i32, i32) {
    %c0_i32 = arith.constant 0 : i32
    %c0_i32_0 = arith.constant 0 : i32
    return %arg0, %c0_i32 : i32, i32
  }
  func.func @transform_1(%arg0: i32, %arg1: i32) -> (i32, i32) {
    %c0_i32 = arith.constant 0 : i32
    %c0_i32_0 = arith.constant 0 : i32
    return %arg1, %c0_i32 : i32, i32
  }
  func.func @transform_2(%arg0: i32, %arg1: i32) -> (i32, i32) {
    %c0_i32 = arith.constant 0 : i32
    return %arg0, %arg1 : i32, i32
  }
}

</mosaic_0001>

<bundles_post_ra>
// kernel: tpu_custom_call.1
= control target key start
LH: loop header
LB: loop body
LE: loop exit
PB: predicated region body
PF: predicated region fallthrough
CT: control target
= control target key end

     0   :  { %7 = vsyncpa [#allocation3], 0  ;;  %s227_s0 = inlined_call_operand.hbm [shape: bf16[8,32], index: 0, kind: input, shape index: {}]   ;;  %s228_s1 = inlined_call_operand.hbm [shape: bf16[16,32], index: 1, kind: input, shape index: {}]   ;;  %s229_s2 = inlined_call_operand.hbm [shape: f32[8,16], index: 2, kind: output, shape index: {}]  }
   0x1   :  { %8 = vsyncpa [#allocation6], 0 }
   0x2   :  { %9 = vsyncpa [#allocation4], 0  ;;  %s196_s9 = smov [#allocation2]   ;;  %s197_s11 = smov [#allocation5]  }
   0x3   :  { %s16_s10 = sshll.u32 %s196_s9, 4  ;;  %s25_s12 = sshll.u32 %s197_s11, 4  ;;  %s17_s10 = int_to_ptr.vmem [resolvable:$true] %s16_s10  ;;  %s26_s12 = int_to_ptr.vmem [resolvable:$true] %s25_s12 }
   0x4   :  { %s138_s13 = scalar_lea.vmem %s17_s10, 64  ;;  %p143_p1 = scmp.lt.s32.totalorder %s17_s10, %s17_s10 }
   0x5   :  { %p139_p0 = scmp.ne.s32.totalorder %s17_s10, %s138_s13  ;;  %p144_p2 = scmp.lt.s32.totalorder %s138_s13, %s138_s13 }
   0x7   :  { %p145_p3 = por %p144_p2, %p143_p1 }
   0x9   :  { %p146_p4 = pnand %p145_p3, %p139_p0 }
   0xb   :  { %149 = shalt.err (!%p146_p4)
}
   0xc   :  { %19 = dma.hbm_to_vmem [thread:$0]  %s227_s0, 64, %s17_s10, [#allocation3]  }
   0xd   :  { %s158_s16 = scalar_lea.vmem %s26_s12, 128  ;;  %p163_p6 = scmp.lt.s32.totalorder %s26_s12, %s26_s12 }
   0xe   :  { %p159_p5 = scmp.ne.s32.totalorder %s26_s12, %s158_s16  ;;  %p164_p7 = scmp.lt.s32.totalorder %s158_s16, %s158_s16 }
  0x10   :  { %p165_p8 = por %p164_p7, %p163_p6 }
  0x12   :  { %p166_p9 = pnand %p165_p8, %p159_p5 }
  0x14   :  { %169 = shalt.err (!%p166_p9)
}
  0x15   :  { %s198_s17 = smov 64   ;;  %s199_s18 = smov 4  }
  0x16   :  { %31 = dma.hbm_to_vmem [thread:$0]  %s228_s1, 128, %s26_s12, [#allocation6], %s198_s17, %s198_s17, %s199_s18  }
  0x17   :  { %190 = dma.done.wait [#allocation3], 64  }
  0x18   :  { %191 = vsyncadd [#allocation3], 4294967232 }
  0x19   :  { %192 = dma.done.wait [#allocation6], 128  }
  0x1a   :  { %193 = vsyncadd [#allocation6], 4294967168  ;;  %v200_v0 = vmov 0.0   ;;  %vm201_vm0 = vmmov 0   ;;  %vm47_vm1 = vcmask 261120   ;;  %v129_v1 = vld [vmem:[#allocation5] sm:$0xff]  }
  0x1b   :  { %116 = vmatprep.subr.bf16.mxu0 %v200_v0  ;;  %118 = vmatprep.mubr.msk.bf16.mxu0 %vm201_vm0, %v200_v0  ;;  %v52_v2 = vsel %vm47_vm1, %v129_v1, 0  ;;  %v39_v3 = vld [vmem:[#allocation2] sm:$0xf]  ;;  %s202_s0 = smov [#allocation7]   ;;  %vm94_vm2 = vcmask 130048  }
  0x1c   :  { %117 = vmatpush3.bf16.xpose.msra.mxu0 %v52_v2  ;;  %s102_s21 = sshll.u32 %s202_s0, 4  ;;  %s103_s21 = int_to_ptr.vmem [resolvable:$true] %s102_s21 }
  0x1d   :  { %s170_s1 = scalar_lea.vmem %s103_s21, 128  ;;  %p175_p11 = scmp.lt.s32.totalorder %s103_s21, %s103_s21 }
  0x1e   :  { %p171_p10 = scmp.ne.s32.totalorder %s103_s21, %s170_s1  ;;  %p176_p12 = scmp.lt.s32.totalorder %s170_s1, %s170_s1 }
  0x20   :  { %p177_p13 = por %p176_p12, %p175_p11 }
  0x22   :  { %p178_p0 = pnand %p177_p13, %p171_p10 }
  0x23   :  { %119 = vmatmul.mubr.msk.bf16.vlgmr.msra.gmra.mxu0 %vm47_vm1, %v39_v3 }
  0xe3   :  { %v88_v4 = vpop.f32.mrf.mxu0 }
  0xe4   :  { %95 = vst.msk [vmem:[#allocation7] sm:$0xff] %vm94_vm2, %v88_v4 }
  0xe5   :  { %v120_v5 = vpop.f32.mrf.mxu0 }
  0xe6   :  { %181 = shalt.err (!%p178_p0)
}
  0xe7   :  { %105 = dma.vmem_to_hbm [thread:$0]  %s103_s21, 128, %s229_s2, [#allocation4]   ;;  %v91_v6 = vpop.f32.mrf.mxu0 }
  0xe9   :  { %v121_v7 = vpop.f32.mrf.mxu0 }
  0xea   :  { %194 = dma.done.wait [#allocation4], 128  }
  0xeb   :  { %195 = vsyncadd [#allocation4], 4294967168 }
  0xec   :  { %109 = vsyncpa [#allocation3], 1 }
  0xed   :  { %110 = vsyncpa [#allocation6], 1 }
  0xee   :  { %111 = vsyncpa [#allocation4], 1 }

</bundles_post_ra>
